<compile_context>
chip_gen: v6e
topology: v6e:2x2x1
jax: 0.10.0
libtpu: 0.0.40
codegen_flags: <defaults>
</compile_context>

<pallas_src>
from functools import partial

import jax
import jax.numpy as jnp
from jax.experimental import pallas as pl
from jax.experimental.pallas import tpu as pltpu


# ---------------------------------------------------------------------------
# VMEM budget (generation-aware, with a conservative 64 MiB fallback).
# ---------------------------------------------------------------------------
def _vmem_budget_bytes():
    cap = 64 * 1024 * 1024
    try:
        info = pltpu.get_tpu_info()
        cap = int(getattr(info, "vmem_capacity_bytes", cap))
    except Exception:
        pass
    return int(cap * 0.7)  # leave headroom for compiler scratch / double buffers


def _pick_row_tile(h, wc, itemsize, budget):
    """Largest multiple-of-8 divisor of H whose pass-2 footprint fits budget."""
    candidates = [d for d in range(8, h + 1, 8) if h % d == 0]
    if not candidates:
        return h  # full-height block is always layout-legal
    per_row = wc * itemsize
    best = candidates[0]
    for th in candidates:
        # pass 2 footprint ~= 2*(in block) + 2*(out block) = 4 * th * W*C * bytes
        if 4 * th * per_row <= int(budget * 0.8):
            best = th
    return best


# ---------------------------------------------------------------------------
# Fused single-pass kernel: pooled reduce + squeeze/excite + scaled write,
# one image slab (1, H, W*C) per grid step.
# ---------------------------------------------------------------------------
def _ca_fused_kernel(x_ref, w1t_ref, w2t_ref, o_ref, *, inv_hw):
    x = x_ref[0]                                                     # (H, WC)
    y = jnp.sum(x, axis=0, keepdims=True, dtype=jnp.float32) * inv_hw  # (1, WC)
    y1 = jnp.maximum(
        jnp.dot(y, w1t_ref[...], preferred_element_type=jnp.float32), 0.0)
    sc = jax.nn.sigmoid(
        jnp.dot(y1, w2t_ref[...], preferred_element_type=jnp.float32))  # (1, WC)
    o_ref[0] = x * sc.astype(o_ref.dtype)


# ---------------------------------------------------------------------------
# Two-pass fallback, pass 1: lane-dense row-sum accumulation + SE finalize.
# Output is the per-image scale already broadcast to (1, 1, W*C).
# ---------------------------------------------------------------------------
def _ca_scale_kernel(x_ref, w1t_ref, w2t_ref, scale_ref, *, inv_hw):
    r = pl.program_id(1)

    @pl.when(r == 0)
    def _init():
        scale_ref[...] = jnp.zeros_like(scale_ref)

    scale_ref[0] += jnp.sum(x_ref[0], axis=0, keepdims=True,
                            dtype=jnp.float32)                        # (1, WC)

    @pl.when(r == pl.num_programs(1) - 1)
    def _finalize():
        y = scale_ref[0] * inv_hw                                     # (1, WC)
        y1 = jnp.maximum(
            jnp.dot(y, w1t_ref[...], preferred_element_type=jnp.float32), 0.0)
        scale_ref[0] = jax.nn.sigmoid(
            jnp.dot(y1, w2t_ref[...], preferred_element_type=jnp.float32))


# ---------------------------------------------------------------------------
# Two-pass fallback, pass 2: lane-dense channel scaling in the input dtype.
# ---------------------------------------------------------------------------
def _ca_apply_kernel(x_ref, s_ref, o_ref):
    s = s_ref[0].astype(o_ref.dtype)                                  # (1, WC)
    o_ref[0] = x_ref[0] * s


def ca_layer(x, w_du1, w_du2, *, row_tile=None, force_two_pass=False):
    """Channel attention: x * sigmoid(W2 @ relu(W1 @ mean_hw(x))), NHWC layout."""
    N, H, W, C = x.shape
    Cr = w_du1.shape[1]
    WC = W * C
    inv_hw = 1.0 / float(H * W)
    itemsize = jnp.dtype(x.dtype).itemsize
    image_bytes = H * WC * itemsize

    budget = _vmem_budget_bytes()
    vmem_limit = budget

    x_flat = x.reshape(N, H, WC)  # free contiguous reshape
    # Pre-tiled SE weights: fold-over-W and broadcast-over-W become part of the
    # two tiny matmuls (no in-kernel reshape / tile, no wrapper scale round-trip).
    w1t = jnp.tile(w_du1, (W, 1)).astype(jnp.float32)   # (WC, Cr)
    w2t = jnp.tile(w_du2, (1, W)).astype(jnp.float32)   # (Cr, WC)

    # ---- Fused single pass: 1 read + 1 write of x when the slab fits VMEM ----
    use_fused = (not force_two_pass) and (
        4 * image_bytes + (1 << 20) <= budget)

    if use_fused:
        out_flat = pl.pallas_call(
            partial(_ca_fused_kernel, inv_hw=inv_hw),
            out_shape=jax.ShapeDtypeStruct((N, H, WC), x.dtype),
            grid=(N,),
            in_specs=[
                pl.BlockSpec((1, H, WC), lambda b: (b, 0, 0)),
                pl.BlockSpec((WC, Cr), lambda b: (0, 0)),
                pl.BlockSpec((Cr, WC), lambda b: (0, 0)),
            ],
            out_specs=pl.BlockSpec((1, H, WC), lambda b: (b, 0, 0)),
            compiler_params=pltpu.CompilerParams(
                dimension_semantics=("parallel",),
                vmem_limit_bytes=vmem_limit),
        )(x_flat, w1t, w2t)
        return out_flat.reshape(N, H, W, C)

    # ---- Two-pass row-tiled fallback -----------------------------------------
    th = _pick_row_tile(H, WC, itemsize, budget) if row_tile is None else row_tile
    assert H % th == 0, "row tile must divide H"
    assert th % 8 == 0 or th == H, "row tile must be 8-aligned or full height"
    n_rt = H // th

    # Pass 1: per-image scale, already broadcast to (N, 1, W*C), f32.
    scale = pl.pallas_call(
        partial(_ca_scale_kernel, inv_hw=inv_hw),
        out_shape=jax.ShapeDtypeStruct((N, 1, WC), jnp.float32),
        grid=(N, n_rt),
        in_specs=[
            pl.BlockSpec((1, th, WC), lambda b, r: (b, r, 0)),
            pl.BlockSpec((WC, Cr), lambda b, r: (0, 0)),
            pl.BlockSpec((Cr, WC), lambda b, r: (0, 0)),
        ],
        out_specs=pl.BlockSpec((1, 1, WC), lambda b, r: (b, 0, 0)),
        compiler_params=pltpu.CompilerParams(
            dimension_semantics=("parallel", "arbitrary"),
            vmem_limit_bytes=vmem_limit),
    )(x_flat, w1t, w2t)

    # Pass 2: lane-dense scale & write.
    out_flat = pl.pallas_call(
        _ca_apply_kernel,
        out_shape=jax.ShapeDtypeStruct((N, H, WC), x.dtype),
        grid=(N, n_rt),
        in_specs=[
            pl.BlockSpec((1, th, WC), lambda b, r: (b, r, 0)),
            pl.BlockSpec((1, 1, WC), lambda b, r: (b, 0, 0)),
        ],
        out_specs=pl.BlockSpec((1, th, WC), lambda b, r: (b, r, 0)),
        compiler_params=pltpu.CompilerParams(
            dimension_semantics=("parallel", "parallel"),
            vmem_limit_bytes=vmem_limit),
    )(x_flat, scale)

    return out_flat.reshape(N, H, W, C)


# ---------------------------------------------------------------------------
# Pure-JAX reference for correctness checking.
# ---------------------------------------------------------------------------
def ca_reference(x, w_du1, w_du2):
    y = jnp.mean(x, axis=(1, 2))                 # (N, C)
    y = jnp.maximum(y @ w_du1, 0.0)
    y = jax.nn.sigmoid(y @ w_du2)
    return x * y[:, None, None, :]


if __name__ == "__main__":
    key = jax.random.PRNGKey(0)
    kx, k1, k2 = jax.random.split(key, 3)

    # Equivalent to PyTorch NCHW input (2, 32, 16, 16), channel=32, reduction=16.
    N, H, W, C, reduction = 2, 16, 16, 32, 16
    Cr = C // reduction
    x = jax.random.normal(kx, (N, H, W, C), jnp.float32)
    w_du1 = jax.random.normal(k1, (C, Cr), jnp.float32) * 0.1
    w_du2 = jax.random.normal(k2, (Cr, C), jnp.float32) * 0.1

    ref = ca_reference(x, w_du1, w_du2)

    # Default path: fused single pass (one read + one write of x).
    out_fused = jax.block_until_ready(ca_layer(x, w_du1, w_du2))
    # Fallback path: two-pass, row_tile=8 -> exercises the multi-step reduction
    # (pl.when init / accumulate / finalize) used for large feature maps.
    out_tiled = jax.block_until_ready(
        ca_layer(x, w_du1, w_du2, row_tile=8, force_two_pass=True))

    for name, out in (("fused", out_fused), ("two-pass", out_tiled)):
        if not jnp.allclose(out, ref, rtol=1e-4, atol=1e-4):
            err = float(jnp.max(jnp.abs(out - ref)))
            raise AssertionError(
                f"Pallas CALayer ({name}) output mismatch (max abs err {err})")

    print("KERNEL_OK")
</pallas_src>

<mosaic_0001>
module attributes {stable_mosaic.version = 11 : i64} {
  func.func @_ca_fused_kernel(%arg0: i32, %arg1: memref<1x16x512xf32, #tpu.memory_space<vmem>>, %arg2: memref<512x2xf32, #tpu.memory_space<vmem>>, %arg3: memref<2x512xf32, #tpu.memory_space<vmem>>, %arg4: memref<1x16x512xf32, #tpu.memory_space<vmem>>) attributes {dimension_semantics = [#tpu.dimension_semantics<parallel>], iteration_bounds = array<i64: 2>, scalar_prefetch = 0 : i64, scratch_operands = 0 : i64, tpu.core_type = #tpu.core_type<tc>, window_params = [{transform_indices = @transform_0, window_bounds = array<i64: 1, 16, 512>}, {pipeline_mode = #tpu.pipeline_mode<synchronous>, transform_indices = @transform_1, window_bounds = array<i64: 512, 2>}, {pipeline_mode = #tpu.pipeline_mode<synchronous>, transform_indices = @transform_2, window_bounds = array<i64: 2, 512>}, {transform_indices = @transform_3, window_bounds = array<i64: 1, 16, 512>}]} {
    %c0 = arith.constant 0 : index
    %c0_0 = arith.constant 0 : index
    %c0_1 = arith.constant 0 : index
    %0 = vector.load %arg1[%c0, %c0_0, %c0_1] : memref<1x16x512xf32, #tpu.memory_space<vmem>>, vector<1x16x512xf32>
    %1 = vector.shape_cast %0 : vector<1x16x512xf32> to vector<16x512xf32>
    %cst = arith.constant dense<0.000000e+00> : vector<512xf32>
    %2 = vector.multi_reduction <add>, %1, %cst [0] : vector<16x512xf32> to vector<512xf32>
    %3 = vector.shape_cast %2 : vector<512xf32> to vector<1x512xf32>
    %cst_2 = arith.constant 3.906250e-03 : f32
    %4 = vector.broadcast %cst_2 : f32 to vector<1x512xf32>
    %5 = arith.mulf %3, %4 : vector<1x512xf32>
    %c0_3 = arith.constant 0 : index
    %c0_4 = arith.constant 0 : index
    %6 = vector.load %arg2[%c0_3, %c0_4] : memref<512x2xf32, #tpu.memory_space<vmem>>, vector<512x2xf32>
    %cst_5 = arith.constant dense<0.000000e+00> : vector<1x2xf32>
    %7 = tpu.matmul %5, %6, %cst_5 {dimension_numbers = #tpu.dot_dimension_numbers<[1], [0], [0], [1], [0, 0, 1, 1], [], []>} : vector<1x512xf32>, vector<512x2xf32>, vector<1x2xf32> -> vector<1x2xf32>
    %cst_6 = arith.constant 0.000000e+00 : f32
    %8 = vector.broadcast %cst_6 : f32 to vector<1x2xf32>
    %9 = arith.maximumf %7, %8 : vector<1x2xf32>
    %c0_7 = arith.constant 0 : index
    %c0_8 = arith.constant 0 : index
    %10 = vector.load %arg3[%c0_7, %c0_8] : memref<2x512xf32, #tpu.memory_space<vmem>>, vector<2x512xf32>
    %cst_9 = arith.constant dense<0.000000e+00> : vector<1x512xf32>
    %11 = tpu.matmul %9, %10, %cst_9 {dimension_numbers = #tpu.dot_dimension_numbers<[1], [0], [0], [1], [0, 0, 1, 1], [], []>} : vector<1x2xf32>, vector<2x512xf32>, vector<1x512xf32> -> vector<1x512xf32>
    %12 = arith.negf %11 : vector<1x512xf32>
    %13 = math.exp %12 : vector<1x512xf32>
    %cst_10 = arith.constant 1.000000e+00 : f32
    %14 = vector.broadcast %cst_10 : f32 to vector<1x512xf32>
    %15 = arith.addf %14, %13 : vector<1x512xf32>
    %16 = arith.divf %14, %15 : vector<1x512xf32>
    %17 = vector.broadcast %16 : vector<1x512xf32> to vector<16x512xf32>
    %18 = arith.mulf %1, %17 : vector<16x512xf32>
    %c0_11 = arith.constant 0 : index
    %c0_12 = arith.constant 0 : index
    %c0_13 = arith.constant 0 : index
    %19 = vector.load %arg4[%c0_11, %c0_12, %c0_13] : memref<1x16x512xf32, #tpu.memory_space<vmem>>, vector<1x16x512xf32>
    %20 = vector.shape_cast %19 : vector<1x16x512xf32> to vector<16x512xf32>
    %21 = vector.shape_cast %18 : vector<16x512xf32> to vector<1x16x512xf32>
    tpu.vector_store %arg4[%c0_11, %c0_12, %c0_13], %21 {strides = array<i32>} : memref<1x16x512xf32, #tpu.memory_space<vmem>>, vector<1x16x512xf32>,
    return
  }
  func.func @transform_0(%arg0: i32) -> (i32, i32, i32) {
    %c0_i32 = arith.constant 0 : i32
    %c0_i32_0 = arith.constant 0 : i32
    %c0_i32_1 = arith.constant 0 : i32
    return %arg0, %c0_i32, %c0_i32_0 : i32, i32, i32
  }
  func.func @transform_1(%arg0: i32) -> (i32, i32) {
    %c0_i32 = arith.constant 0 : i32
    %c0_i32_0 = arith.constant 0 : i32
    %c0_i32_1 = arith.constant 0 : i32
    return %c0_i32, %c0_i32_0 : i32, i32
  }
  func.func @transform_2(%arg0: i32) -> (i32, i32) {
    %c0_i32 = arith.constant 0 : i32
    %c0_i32_0 = arith.constant 0 : i32
    %c0_i32_1 = arith.constant 0 : i32
    return %c0_i32, %c0_i32_0 : i32, i32
  }
  func.func @transform_3(%arg0: i32) -> (i32, i32, i32) {
    %c0_i32 = arith.constant 0 : i32
    %c0_i32_0 = arith.constant 0 : i32
    %c0_i32_1 = arith.constant 0 : i32
    return %arg0, %c0_i32, %c0_i32_0 : i32, i32, i32
  }
}

</mosaic_0001>

<bundles_post_ra>
// kernel: tpu_custom_call.1
= control target key start
LH: loop header
LB: loop body
LE: loop exit
PB: predicated region body
PF: predicated region fallthrough
CT: control target
= control target key end

     0   :  { %8 = vsyncpa [#allocation3], 0  ;;  %s1299_s0 = inlined_call_operand.vmem [shape: f32[2,16,512], index: 0, kind: input, shape index: {}]   ;;  %s1300_s1 = inlined_call_operand.vmem [shape: f32[512,2], index: 1, kind: input, shape index: {}]   ;;  %s1301_s2 = inlined_call_operand.vmem [shape: f32[2,512], index: 2, kind: input, shape index: {}]   ;;  %s1302_s3 = inlined_call_operand.hbm [shape: f32[2,16,512], index: 3, kind: output, shape index: {}]  }
   0x1   :  { %10 = vsyncpa [#allocation3 + $0x1], 0  ;;  %s961_s12 = smov 0   ;;  %s963_s13 = smov 0  }
   0x2   :  { %s965_s14 = smov 0   ;;  %s967_s15 = smov 0  }
   0x3 LB: > { %s982_s16 = sadd.s32 4294967295, %s934_s15   ;;  %s720_s17 = sadd.s32 4294967294, %s934_s15   ;;  %s934_s15 = sphi %s967_s15, %s1308_s15   ;;  %s930_s14 = sphi %s965_s14, %s1307_s14   ;;  %s926_s13 = sphi %s963_s13, %s1306_s13   ;;  %s922_s12 = sphi %s961_s12, %s1305_s12  }
   0x4   : > { %s986_s18 = sadd.s32 1, %s934_s15   ;;  %s91_s19 = sadd.s32 1, %s930_s14 }
   0x5   : > { %s88_s20 = ssub.s32 %s934_s15, %s986_s18  ;;  %p101_p0 = scmp.ne.s32.totalorder %s930_s14, %s926_s13 }
   0x6   : > { %p89_p1 = scmp.eq.s32.totalorder %s88_s20, 0  ;;  %p102_p2 = scmp.eq.s32.totalorder %s982_s16, 1 }
   0x7   : > { %p107_p3 = scmp.ne.s32.totalorder %s926_s13, %s922_s12  ;;  %p108_p4 = scmp.eq.s32.totalorder %s720_s17, 1 }
   0x8   : > { %s997_s21 = scalar_select %p89_p1, %s930_s14, %s91_s19  }
   0x9   : > { %p999_p5 = por %p102_p2, %p101_p0  ;;  %p1003_p6 = por %p108_p4, %p107_p3 }
   0xa   : > { %p723_p7 = scmp.ge.s32.totalorder %s934_s15, 1  ;;  %p140_p8 = scmp.lt.s32.totalorder %s934_s15, 3 }
   0xc   : > { %p141_p9 = pnand %p723_p7, %p140_p8 }
   0xd   : > { %p164_p10 = scmp.lt.s32.totalorder (!%p141_p9), %s982_s16, 1  ;;  %s938_s24 = smov (!%p141_p9), [#allocation2]  }
   0xe   : > { %144 = sbr.rel (%p141_p9) target bundleno = 505 (0x1f9), region = 32  ;;  %s878_s27 = sshll.u32 (!%p141_p9), %s938_s24, 4  ;;  %s879_s27 = int_to_ptr.vmem [resolvable:$false] %s878_s27 }
   0xf   : > { %s880_s29 = scalar_lea.vmem (!%p141_p9), %s879_s27, 2048 }
  0x13   : > { %v240_v0 = vld [vmem:[%s1300_s1 + $0xf8] sm:$0xff]  ;;  %v239_v4 = vld [vmem:[%s1300_s1 + $0xf0] sm:$0xff]  ;;  %v238_v8 = vld [vmem:[%s1300_s1 + $0xe8] sm:$0xff]  ;;  %s1097_s26 = scalar_select %p164_p10, %s982_s16, 1  ;;  %vm437_vm0 = vcmask 1041408   ;;  %vm433_vm1 = vcmask 15360  }
  0x14   : > { %v272_v1 = vld [vmem:[%s1300_s1 + $0x1f8] sm:$0xff]  ;;  %744 = vmatprep.subr.mxu0 %v240_v0  ;;  %v271_v5 = vld [vmem:[%s1300_s1 + $0x1f0] sm:$0xff]  ;;  %v270_v9 = vld [vmem:[%s1300_s1 + $0x1e8] sm:$0xff] }
  0x15   : > { %v224_v2 = vld [vmem:[%s1300_s1 + $0x78] sm:$0xff]  ;;  %779 = vmatprep.subr.mxu1 %v272_v1  ;;  %v223_v6 = vld [vmem:[%s1300_s1 + $0x70] sm:$0xff]  ;;  %v222_v10 = vld [vmem:[%s1300_s1 + $0x68] sm:$0xff]  ;;  %s742_s25 = sshll.u32 %s1097_s26, 6  ;;  %s161_s26 = sand.u32 1, %s926_s13  }
  0x16   : > { %v256_v3 = vld [vmem:[%s1300_s1 + $0x178] sm:$0xff]  ;;  %745 = vmatpush3.msra.mxu0 %v224_v2  ;;  %v255_v7 = vld [vmem:[%s1300_s1 + $0x170] sm:$0xff]  ;;  %v254_v11 = vld [vmem:[%s1300_s1 + $0x168] sm:$0xff]  ;;  %s168_s28 = scalar_lea.vmem %s1299_s0, %s742_s25  ;;  %s724_s8 = sshll.u32 %s161_s26, 6 }
  0x17   : > { %780 = vmatpush3.msra.mxu1 %v256_v3  ;;  %746 = vmatprep.subr.mxu0 %v239_v4  ;;  %v237_v12 = vld [vmem:[%s1300_s1 + $0xe0] sm:$0xff]  ;;  %v236_v16 = vld [vmem:[%s1300_s1 + $0xd8] sm:$0xff]  ;;  %v235_v20 = vld [vmem:[%s1300_s1 + $0xd0] sm:$0xff]  ;;  %s743_s25 = sshll.u32 %s982_s16, 10  ;;  %s163_s9 = scalar_lea.vmem [#allocation2], %s724_s8 }
  0x18   : > { %781 = vmatprep.subr.mxu1 %v271_v5  ;;  %747 = vmatpush3.msra.mxu0 %v223_v6  ;;  %v269_v13 = vld [vmem:[%s1300_s1 + $0x1e0] sm:$0xff]  ;;  %v268_v17 = vld [vmem:[%s1300_s1 + $0x1d8] sm:$0xff]  ;;  %v267_v21 = vld [vmem:[%s1300_s1 + $0x1d0] sm:$0xff]  ;;  %s658_s10 = sshll.u32 %s163_s9, 4  ;;  %s1251_s17 = scalar_lea.hbm %s1302_s3, %s743_s25  ;;  %s1253_s10 = int_to_ptr.vmem [resolvable:$true] %s658_s10 }
  0x19   : > { %782 = vmatpush3.msra.mxu1 %v255_v7  ;;  %748 = vmatprep.subr.mxu0 %v238_v8  ;;  %v221_v14 = vld [vmem:[%s1300_s1 + $0x60] sm:$0xff]  ;;  %v220_v18 = vld [vmem:[%s1300_s1 + $0x58] sm:$0xff]  ;;  %v219_v22 = vld [vmem:[%s1300_s1 + $0x50] sm:$0xff]  ;;  %s1259_s19 = scalar_lea.sflag [#allocation3], %s161_s26  ;;  %s874_s20 = scalar_lea.vmem %s1253_s10, 1024 }
  0x1a   : > { %783 = vmatprep.subr.mxu1 %v270_v9  ;;  %v253_v15 = vld [vmem:[%s1300_s1 + $0x160] sm:$0xff]  ;;  %749 = vmatpush3.msra.mxu0 %v222_v10  ;;  %v252_v19 = vld [vmem:[%s1300_s1 + $0x158] sm:$0xff]  ;;  %v251_v23 = vld [vmem:[%s1300_s1 + $0x150] sm:$0xff]  ;;  %p875_p11 = scmp.ne.s32.totalorder %s1253_s10, %s874_s20  ;;  %p881_p0 = scmp.lt.s32.totalorder %s1253_s10, %s879_s27 }
  0x1b   : > { %784 = vmatpush3.msra.mxu1 %v254_v11  ;;  %750 = vmatprep.subr.mxu0 %v237_v12  ;;  %v234_v24 = vld [vmem:[%s1300_s1 + $0xc8] sm:$0xff]  ;;  %v233_v28 = vld [vmem:[%s1300_s1 + $0xc0] sm:$0xff]  ;;  %v232_v32 = vld [vmem:[%s1300_s1 + $0xb8] sm:$0xff]  ;;  %p882_p1 = scmp.lt.s32.totalorder %s880_s29, %s874_s20 }
  0x1c   : > { %785 = vmatprep.subr.mxu1 %v269_v13  ;;  %751 = vmatpush3.msra.mxu0 %v221_v14  ;;  %v266_v25 = vld [vmem:[%s1300_s1 + $0x1c8] sm:$0xff]  ;;  %v265_v29 = vld [vmem:[%s1300_s1 + $0x1c0] sm:$0xff]  ;;  %v264_v33 = vld [vmem:[%s1300_s1 + $0x1b8] sm:$0xff]  ;;  %p876_p12 = pnand %p875_p11, %p999_p5 }
  0x1d   : > { %786 = vmatpush3.msra.mxu1 %v253_v15  ;;  %752 = vmatprep.subr.mxu0 %v236_v16  ;;  %v218_v26 = vld [vmem:[%s1300_s1 + $0x48] sm:$0xff]  ;;  %v217_v30 = vld [vmem:[%s1300_s1 + $0x40] sm:$0xff]  ;;  %v216_v34 = vld [vmem:[%s1300_s1 + $0x38] sm:$0xff]  ;;  %p883_p2 = por %p882_p1, %p881_p0 }
  0x1e   : > { %787 = vmatprep.subr.mxu1 %v268_v17  ;;  %753 = vmatpush3.msra.mxu0 %v220_v18  ;;  %v250_v27 = vld [vmem:[%s1300_s1 + $0x148] sm:$0xff]  ;;  %v249_v31 = vld [vmem:[%s1300_s1 + $0x140] sm:$0xff]  ;;  %v248_v35 = vld [vmem:[%s1300_s1 + $0x138] sm:$0xff]  ;;  %p877_p13 = pneg %p876_p12 }
  0x1f   : > { %788 = vmatpush3.msra.mxu1 %v252_v19  ;;  %754 = vmatprep.subr.mxu0 %v235_v20  ;;  %v231_v36 = vld [vmem:[%s1300_s1 + $0xb0] sm:$0xff]  ;;  %v230_v40 = vld [vmem:[%s1300_s1 + $0xa8] sm:$0xff]  ;;  %v229_v44 = vld [vmem:[%s1300_s1 + $0xa0] sm:$0xff] }
  0x20   : > { %789 = vmatprep.subr.mxu1 %v267_v21  ;;  %755 = vmatpush3.msra.mxu0 %v219_v22  ;;  %v263_v37 = vld [vmem:[%s1300_s1 + $0x1b0] sm:$0xff]  ;;  %v262_v41 = vld [vmem:[%s1300_s1 + $0x1a8] sm:$0xff]  ;;  %v261_v45 = vld [vmem:[%s1300_s1 + $0x1a0] sm:$0xff]  ;;  %p884_p3 = pnand %p883_p2, %p877_p13 }
  0x21   : > { %790 = vmatpush3.msra.mxu1 %v251_v23  ;;  %756 = vmatprep.subr.mxu0 %v234_v24  ;;  %v215_v38 = vld [vmem:[%s1300_s1 + $0x30] sm:$0xff]  ;;  %v214_v42 = vld [vmem:[%s1300_s1 + $0x28] sm:$0xff]  ;;  %v213_v46 = vld [vmem:[%s1300_s1 + $0x20] sm:$0xff] }
  0x22   : > { %791 = vmatprep.subr.mxu1 %v266_v25  ;;  %757 = vmatpush3.msra.mxu0 %v218_v26  ;;  %v247_v39 = vld [vmem:[%s1300_s1 + $0x130] sm:$0xff]  ;;  %v246_v43 = vld [vmem:[%s1300_s1 + $0x128] sm:$0xff]  ;;  %v245_v47 = vld [vmem:[%s1300_s1 + $0x120] sm:$0xff] }
  0x23   : > { %792 = vmatpush3.msra.mxu1 %v250_v27  ;;  %758 = vmatprep.subr.mxu0 %v233_v28  ;;  %v228_v48 = vld [vmem:[%s1300_s1 + $0x98] sm:$0xff]  ;;  %v1175_v52 = vld [vmem:[%s168_s28 + $0x8] sm:$0xff]  ;;  %v1185_v57 = vld [vmem:[%s168_s28] sm:$0xff] }
  0x24   : > { %793 = vmatprep.subr.mxu1 %v265_v29  ;;  %759 = vmatpush3.msra.mxu0 %v217_v30  ;;  %v260_v49 = vld [vmem:[%s1300_s1 + $0x198] sm:$0xff]  ;;  %v1177_v53 = vld [vmem:[%s168_s28 + $0x28] sm:$0xff]  ;;  %v1189_v59 = vld [vmem:[%s168_s28 + $0x20] sm:$0xff] }
  0x25   : > { %794 = vmatpush3.msra.mxu1 %v249_v31  ;;  %760 = vmatprep.subr.mxu0 %v232_v32  ;;  %v212_v50 = vld [vmem:[%s1300_s1 + $0x18] sm:$0xff]  ;;  %v184_v54 = vadd.f32 %v1177_v53, %v1175_v52  ;;  %v1191_v60 = vld [vmem:[%s168_s28 + $0x10] sm:$0xff]  ;;  %v177_v1 = vadd.f32 %v1189_v59, %v1185_v57  ;;  %v226_v6 = vld [vmem:[%s1300_s1 + $0x88] sm:$0xff] }
  0x26   : > { %795 = vmatprep.subr.mxu1 %v264_v33  ;;  %761 = vmatpush3.msra.mxu0 %v216_v34  ;;  %v244_v51 = vld [vmem:[%s1300_s1 + $0x118] sm:$0xff]  ;;  %v1193_v61 = vld [vmem:[%s168_s28 + $0x30] sm:$0xff]  ;;  %v258_v7 = vld [vmem:[%s1300_s1 + $0x188] sm:$0xff] }
  0x27   : > { %796 = vmatpush3.msra.mxu1 %v248_v35  ;;  %762 = vmatprep.subr.mxu0 %v231_v36  ;;  %v1181_v55 = vld [vmem:[%s168_s28 + $0x18] sm:$0xff]  ;;  %v227_v62 = vld [vmem:[%s1300_s1 + $0x90] sm:$0xff]  ;;  %v185_v0 = vrot.slane %v184_v54, 4  ;;  %v191_v2 = vadd.f32 %v1193_v61, %v1191_v60  ;;  %v178_v9 = vrot.slane %v177_v1, 4  ;;  %v210_v11 = vld [vmem:[%s1300_s1 + $0x8] sm:$0xff] }
  0x28   : > { %797 = vmatprep.subr.mxu1 %v263_v37  ;;  %763 = vmatpush3.msra.mxu0 %v215_v38  ;;  %v1183_v56 = vld [vmem:[%s168_s28 + $0x38] sm:$0xff]  ;;  %v259_v63 = vld [vmem:[%s1300_s1 + $0x190] sm:$0xff]  ;;  %v242_v12 = vld [vmem:[%s1300_s1 + $0x108] sm:$0xff] }
  0x29   : > { %798 = vmatpush3.msra.mxu1 %v247_v39  ;;  %764 = vmatprep.subr.mxu0 %v230_v40  ;;  %v198_v58 = vadd.f32 %v1183_v56, %v1181_v55  ;;  %v211_v3 = vld [vmem:[%s1300_s1 + $0x10] sm:$0xff]  ;;  %v186_v8 = vadd.f32 %v185_v0, %v184_v54  ;;  %v192_v10 = vrot.slane %v191_v2, 4  ;;  %v225_v14 = vld [vmem:[%s1300_s1 + $0x80] sm:$0xff]  ;;  %v179_v17 = vadd.f32 %v178_v9, %v177_v1 }
  0x2a   : > { %799 = vmatprep.subr.mxu1 %v262_v41  ;;  %765 = vmatpush3.msra.mxu0 %v214_v42  ;;  %v243_v4 = vld [vmem:[%s1300_s1 + $0x110] sm:$0xff]  ;;  %v257_v15 = vld [vmem:[%s1300_s1 + $0x180] sm:$0xff]  ;;  %v936_v40 = vmov 1983009808   ;;  %v420_v42 = vlaneseq  ;;  %v937_v54 = vmov 0.0  }
  0x2b   : > { %800 = vmatpush3.msra.mxu1 %v246_v43  ;;  %766 = vmatprep.subr.mxu0 %v229_v44  ;;  %v199_v5 = vrot.slane %v198_v58, 4  ;;  %v187_v16 = vrot.slane %v186_v8, 2  ;;  %v193_v18 = vadd.f32 %v192_v10, %v191_v2  ;;  %v209_v19 = vld [vmem:[%s1300_s1] sm:$0xff]  ;;  %v180_v23 = vrot.slane %v179_v17, 2 }
  0x2c   : > { %801 = vmatprep.subr.mxu1 %v261_v45  ;;  %767 = vmatpush3.msra.mxu0 %v213_v46  ;;  %v241_v20 = vld [vmem:[%s1300_s1 + $0x100] sm:$0xff]  ;;  %v418_v41 = vunpack.c.l.s4 %v936_v40  ;;  %v421_v44 = vshrl.u32 %v420_v42, 7 }
  0x2d   : > { %802 = vmatpush3.msra.mxu1 %v245_v47  ;;  %768 = vmatprep.subr.mxu0 %v228_v48  ;;  %v200_v13 = vadd.f32 %v199_v5, %v198_v58  ;;  %v188_v22 = vadd.f32 %v187_v16, %v186_v8  ;;  %v194_v24 = vrot.slane %v193_v18, 2  ;;  %v181_v27 = vadd.f32 %v180_v23, %v179_v17  ;;  %v414_v45 = vld [vmem:[%s1301_s2] sm:$0xff] }
  0x2e   : > { %803 = vmatprep.subr.mxu1 %v260_v49  ;;  %769 = vmatpush3.msra.mxu0 %v212_v50  ;;  %v419_v43 = vunpack.c.0.s8 %v418_v41  ;;  %v416_v47 = vcombine.high %v414_v45, %v414_v45 }
  0x2f   : > { %804 = vmatpush3.msra.mxu1 %v244_v51  ;;  %770 = vmatprep.subr.mxu0 %v227_v62  ;;  %v201_v21 = vrot.slane %v200_v13, 2  ;;  %v189_v26 = vrot.slane %v188_v22, 1  ;;  %v195_v28 = vadd.f32 %v194_v24, %v193_v18  ;;  %v182_v31 = vrot.slane %v181_v27, 1 }
  0x30   : > { %805 = vmatprep.subr.mxu1 %v259_v63  ;;  %771 = vmatpush3.msra.mxu0 %v211_v3  ;;  %v422_v46 = vsub.s32 %v419_v43, %v421_v44 }
  0x31   : > { %806 = vmatpush3.msra.mxu1 %v243_v4  ;;  %772 = vmatprep.subr.mxu0 %v226_v6  ;;  %v202_v25 = vadd.f32 %v201_v21, %v200_v13  ;;  %v190_v30 = vadd.f32 %v189_v26, %v188_v22  ;;  %v196_v32 = vrot.slane %v195_v28, 1  ;;  %v183_v35 = vadd.f32 %v182_v31, %v181_v27 }
  0x32   : > { %807 = vmatprep.subr.mxu1 %v258_v7  ;;  %773 = vmatpush3.msra.mxu0 %v210_v11  ;;  %v423_v48 = vrot.slane %v414_v45, %v422_v46  ;;  %v430_v49 = vrot.slane %v416_v47, %v422_v46  ;;  %v614_v21 = vsub.s32 0, %v421_v44 }
  0x33   : > { %808 = vmatpush3.msra.mxu1 %v242_v12  ;;  %774 = vmatprep.subr.mxu0 %v225_v14  ;;  %v203_v29 = vrot.slane %v202_v25, 1  ;;  %v206_v34 = vmul.f32 0.00390625, %v190_v30  ;;  %v197_v36 = vadd.f32 %v196_v32, %v195_v28  ;;  %v205_v38 = vmul.f32 0.00390625, %v183_v35 }
  0x34   : > { %809 = vmatprep.subr.mxu1 %v257_v15  ;;  %775 = vmatpush3.msra.mxu0 %v209_v19  ;;  %v431_v50 = vcombine.high %v423_v48, %v423_v48  ;;  %v432_v51 = vcombine.high %v430_v49, %v430_v49 }
  0x35   : > { %810 = vmatpush3.msra.mxu1 %v241_v20  ;;  %v204_v33 = vadd.f32 %v203_v29, %v202_v25  ;;  %337 = vmatprep.mubr.f32.mxu0 %v206_v34  ;;  %v207_v39 = vmul.f32 0.00390625, %v197_v36 }
  0x36   : > { %338 = vmatmul.mubr.f32.vlgmr.msra.gmra.mxu0 %v205_v38  ;;  %727 = vmatprep.subr.msk.mxu0 %vm437_vm0, %v431_v50 }
  0x37   : > { %v208_v37 = vmul.f32 0.00390625, %v204_v33  ;;  %730 = vmatprep.subr.msk.mxu1 %vm437_vm0, %v432_v51  ;;  %728 = vmatpush1.msk.msra.mxu0 %vm437_vm0, %v423_v48 }
  0x38   : > { %510 = vmatprep.mubr.f32.mxu0 %v937_v54 }
  0x39   : > { %407 = vmatprep.mubr.f32.mxu1 %v208_v37 }
  0x3a   : > { %408 = vmatmul.mubr.f32.vlgmr.msra.gmra.mxu1 %v207_v39 }
  0x3b   : > { %731 = vmatpush1.msk.msra.mxu1 %vm437_vm0, %v430_v49  ;;  %581 = vmatprep.mubr.f32.mxu1 %v937_v54 }
  0xf6   : > { %v776_v58 = vpop.f32.mrf.mxu0 }
  0xf8   : > { %v777_v63 = vpop.f32.mrf.mxu0 }
  0xf9   : > { %v778_v1 = vadd.f32 %v777_v63, %v776_v58 }
  0xfa   : > { %v811_v62 = vpop.f32.mrf.mxu1 }
  0xfc   : > { %v812_v0 = vpop.f32.mrf.mxu1 }
  0xfd   : > { %v813_v2 = vadd.f32 %v812_v0, %v811_v62 }
  0xff   : > { %v410_v3 = vadd.f32 %v813_v2, %v778_v1 }
 0x101   : > { %v413_v4 = vmax.f32 %v410_v3, 0.0 }
 0x103   : > { %729 = vmatmul.mubr.msk.f32.vlgmr.msra.gmra.mxu0 %vm433_vm1, %v413_v4  ;;  %732 = vmatmul.mubr.msk.f32.vlgmr.msra.gmra.mxu1 %vm433_vm1, %v413_v4 }
 0x1c3   : > { %v512_v5 = vpop.f32.mrf.mxu0  ;;  %v583_v6 = vpop.f32.mrf.mxu1 }
 0x1c4   : > { %v733_v7 = vmul.f32 -1.442695, %v512_v5  ;;  %v735_v8 = vmul.f32 -1.442695, %v583_v6 }
 0x1c5   : > { %v514_v9 = vpop.f32.mrf.mxu0  ;;  %v585_v10 = vpop.f32.mrf.mxu1 }
 0x1c6   : > { %858 = vpow2.f32 %v733_v7  ;;  %v734_v11 = vmul.f32 -1.442695, %v514_v9  ;;  %v736_v12 = vmul.f32 -1.442695, %v585_v10 }
 0x1c7   : > { %860 = vpow2.f32 %v735_v8 }
 0x1c8   : > { %862 = vpow2.f32 %v734_v11 }
 0x1c9   : > { %864 = vpow2.f32 %v736_v12 }
 0x1d3   : > { %v859_v13 = vpop.eup %858 }
 0x1d4   : > { %v861_v14 = vpop.eup %860  ;;  %v600_v15 = vadd.f32 1.0, %v859_v13 }
 0x1d5   : > { %v863_v16 = vpop.eup %862  ;;  %v602_v17 = vadd.f32 1.0, %v861_v14 }
 0x1d6   : > { %v865_v18 = vpop.eup %864  ;;  %866 = vrcp.f32 %v600_v15  ;;  %v601_v19 = vadd.f32 1.0, %v863_v16 }
 0x1d7   : > { %868 = vrcp.f32 %v602_v17  ;;  %v603_v20 = vadd.f32 1.0, %v865_v18 }
 0x1d8   : > { %870 = vrcp.f32 %v601_v19 }
 0x1d9   : > { %872 = vrcp.f32 %v603_v20 }
 0x1e3   : > { %v867_v22 = vpop.eup %866 }
 0x1e4   : > { %v869_v23 = vpop.eup %868  ;;  %v615_v24 = vrot.slane %v867_v22, %v614_v21 }
 0x1e5   : > { %v871_v25 = vpop.eup %870  ;;  %v623_v26 = vrot.slane %v869_v23, %v614_v21 }
 0x1e6   : > { %v873_v27 = vpop.eup %872  ;;  %v628_v28 = vmul.f32 %v615_v24, %v1185_v57  ;;  %v632_v29 = vmul.f32 %v615_v24, %v1189_v59  ;;  %v619_v30 = vrot.slane %v871_v25, %v614_v21 }
 0x1e7   : > { %v630_v31 = vmul.f32 %v623_v26, %v1191_v60  ;;  %v634_v32 = vmul.f32 %v623_v26, %v1193_v61  ;;  %v627_v33 = vrot.slane %v873_v27, %v614_v21 }
 0x1e8   : > { %636 = vst [vmem:[%s163_s9] sm:$0xff] %v628_v28  ;;  %640 = vst [vmem:[%s163_s9 + $0x20] sm:$0xff] %v632_v29  ;;  %v629_v34 = vmul.f32 %v619_v30, %v1175_v52  ;;  %v633_v35 = vmul.f32 %v619_v30, %v1177_v53 }
 0x1e9   : > { %638 = vst [vmem:[%s163_s9 + $0x10] sm:$0xff] %v630_v31  ;;  %642 = vst [vmem:[%s163_s9 + $0x30] sm:$0xff] %v634_v32  ;;  %v631_v57 = vmul.f32 %v627_v33, %v1181_v55  ;;  %v635_v59 = vmul.f32 %v627_v33, %v1183_v56 }
 0x1ea   : > { %637 = vst [vmem:[%s163_s9 + $0x8] sm:$0xff] %v629_v34  ;;  %641 = vst [vmem:[%s163_s9 + $0x28] sm:$0xff] %v633_v35 }
 0x1eb   : > { %639 = vst [vmem:[%s163_s9 + $0x18] sm:$0xff] %v631_v57  ;;  %643 = vst [vmem:[%s163_s9 + $0x38] sm:$0xff] %v635_v59 }
 0x1ec   : > { %887 = shalt.err (!%p884_p3)
}
 0x1ed   : > { %s888_s30 = scalar_lea.hbm %s1251_s17, 1024  ;;  %s892_s5 = scalar_lea.hbm %s1302_s3, 2048 }
 0x1ee   : > { %p889_p4 = scmp.ne.s32.totalorder %s1251_s17, %s888_s30  ;;  %p893_p9 = scmp.lt.s32.totalorder %s1251_s17, %s1302_s3 }
 0x1ef   : > { %p894_p10 = scmp.lt.s32.totalorder %s892_s5, %s888_s30 }
 0x1f0   : > { %p890_p7 = pnand %p889_p4, %p999_p5 }
 0x1f1   : > { %p895_p11 = por %p894_p10, %p893_p9 }
 0x1f2   : > { %p891_p8 = pneg %p890_p7 }
 0x1f4   : > { %p896_p12 = pnand %p895_p11, %p891_p8 }
 0x1f6   : > { %899 = shalt.err (!%p896_p12)
}
 0x1f7   : > { %s939_s26 = smov 512   ;;  %s940_s8 = smov 32  }
 0x1f8   : > { %814 = dma.vmem_to_hbm [thread:$0]  (%p999_p5), %s1253_s10, 1024, %s1251_s17, %s1259_s19, %s939_s26, %s939_s26, %s940_s8  }
 0x1f9 PF: > { %p820_p13 = scmp.ge.s32.totalorder %s934_s15, 2  ;;  %s673_s25 = sand.u32 1, %s922_s12  }
 0x1fa   : > { %s674_s9 = scalar_lea.sflag [#allocation3], %s673_s25 }
 0x1fb   : > { %p817_p0 = pnand %p820_p13, %p1003_p6 }
 0x1fd   : > { %p818_p1 = pneg %p817_p0 }
 0x1ff   : > { %917 = dma.done.wait (%p818_p1), %s674_s9, 1024  }
 0x200   : > { %919 = vsyncadd (%p818_p1), %s674_s9, 4294966272  ;;  %p13_p2 = scmp.ge.s32.totalorder %s986_s18, 4   ;;  %s1305_s12 = smov %s926_s13 }
 0x201   : > { %s1306_s13 = smov %s930_s14  ;;  %s1307_s14 = smov %s997_s21 }
 0x202   : > { %s1308_s15 = smov %s986_s18  ;;  %15 = sbr.rel (!%p13_p2) target bundleno = 3 (0x3), region = 67 }
 0x207   :  { %679 = vsyncpa [#allocation3], 1 }
 0x208   :  { %681 = vsyncpa [#allocation3 + $0x1], 1 }

</bundles_post_ra>
